<compile_context>
chip_gen: v7x
topology: tpu7x:2x2x1
jax: 0.10.0
libtpu: 0.0.40
codegen_flags: <defaults>
</compile_context>

<pallas_src>
import functools

import jax
import jax.numpy as jnp
from jax.experimental import pallas as pl
from jax.experimental.pallas import tpu as pltpu


_LANE = 128
_VMEM_LIMIT_BYTES = 48 * 1024 * 1024   # raise scoped VMEM (v5e default 16 MiB, v6e/v7x 32 MiB)
_VMEM_TILE_BUDGET = 40 * 1024 * 1024   # tile budget below the limit and v7x's 64 MiB physical
_MAX_BLOCK_ROWS = 4096                 # beyond this, per-step pipeline overhead is negligible


def _round_up(x, m):
    return ((x + m - 1) // m) * m


def _margin_mse_kernel(q_ref, p_ref, n_ref, lab_ref, out_ref, *, scale, batch,
                       block_rows, mask_tail):
    """One batch tile: partial sum over rows of (scale * q.(p-n) - label)^2."""
    # Per-vreg upcast (free on the VPU, no extra HBM bytes) so bf16 inputs get
    # a full-f32 fused dot product.
    q = q_ref[...].astype(jnp.float32)                       # (tb, D)
    d = p_ref[...].astype(jnp.float32) - n_ref[...].astype(jnp.float32)
    margin = jnp.sum(q * d, axis=-1, keepdims=True)          # (tb, 1) f32, XLU lane reduce
    if scale != 1.0:
        margin = margin * scale
    err = margin - lab_ref[...].astype(jnp.float32)          # (tb, 1)
    sq = err * err
    if mask_tail:
        # Last block may extend past the true batch; zero the garbage rows.
        row = jax.lax.broadcasted_iota(jnp.int32, sq.shape, 0)
        valid = (pl.program_id(0) * block_rows + row) < batch
        sq = jnp.where(valid, sq, 0.0)
    part = jnp.sum(sq, axis=0, keepdims=True)                # (1, 1) sublane reduce
    out_ref[...] = jnp.broadcast_to(part, (1, _LANE))        # lane-dense store


def _choose_block_rows(batch, d, itemsize, max_block_rows):
    # VMEM per batch row: 3 embeddings x 2 pipeline buffers, ~2 f32 (tb, D)
    # temporaries for the upcast fused product, and the (tb, 1) label column
    # (one (8,128) f32 tile per 8 rows, double-buffered).
    per_row = 3 * 2 * d * itemsize + 2 * d * 4 + 2 * 512
    tb = int(_VMEM_TILE_BUDGET // per_row)
    tb = min(tb, int(max_block_rows))
    tb -= tb % 8                           # multiple of 8 sublanes
    tb = max(tb, 8)
    if batch >= 4 * 512:
        # v7x: 2 TensorCores share 3.2 TB/s HBM — keep >=4 blocks in flight when
        # the batch is big enough, without dropping below 512 rows per step.
        tb = min(tb, max(512, _round_up(pl.cdiv(batch, 4), 8)))
    if tb >= batch:
        return batch                       # single full-array block, no tail
    return tb


def margin_mse_loss(emb_query, emb_pos, emb_neg, labels, *, scale=1.0,
                    max_block_rows=_MAX_BLOCK_ROWS):
    """emb_*: [B, D] (f32 or bf16); labels: [B]. Returns scalar f32 loss."""
    B, D = emb_query.shape
    itemsize = jnp.dtype(emb_query.dtype).itemsize

    tb = _choose_block_rows(B, D, itemsize, max_block_rows)
    nb = pl.cdiv(B, tb)
    mask_tail = (B % tb) != 0

    lab = labels.reshape(B, 1).astype(jnp.float32)   # metadata-only reshape

    emb_spec = pl.BlockSpec((tb, D), lambda i: (i, 0))
    lab_spec = pl.BlockSpec((tb, 1), lambda i: (i, 0))
    out_spec = pl.BlockSpec((1, _LANE), lambda i: (i, 0))

    cost = pl.CostEstimate(
        flops=4 * B * D,                                       # sub + mul + reduce-add
        transcendentals=0,
        bytes_accessed=3 * B * D * itemsize + B * 4 + nb * _LANE * 4,
    )

    kernel = functools.partial(
        _margin_mse_kernel, scale=float(scale), batch=B,
        block_rows=tb, mask_tail=mask_tail)

    partials = pl.pallas_call(
        kernel,
        out_shape=jax.ShapeDtypeStruct((nb, _LANE), jnp.float32),
        grid_spec=pltpu.PrefetchScalarGridSpec(
            num_scalar_prefetch=0,
            grid=(nb,),
            in_specs=[emb_spec, emb_spec, emb_spec, lab_spec],
            out_specs=out_spec,
        ),
        compiler_params=pltpu.CompilerParams(
            dimension_semantics=("parallel",),        # independent blocks (v7x megacore OK)
            vmem_limit_bytes=_VMEM_LIMIT_BYTES,
        ),
        cost_estimate=cost,
    )(emb_query, emb_pos, emb_neg, lab)

    # Tiny final reduction: one partial per grid block.
    return jnp.sum(partials[:, 0]) / B


def margin_mse_loss_ref(emb_query, emb_pos, emb_neg, labels, *, scale=1.0):
    q = emb_query.astype(jnp.float32)
    p = emb_pos.astype(jnp.float32)
    n = emb_neg.astype(jnp.float32)
    scores_pos = jnp.sum(q * p, axis=-1) * scale
    scores_neg = jnp.sum(q * n, axis=-1) * scale
    margin_pred = scores_pos - scores_neg
    return jnp.mean((margin_pred - labels.astype(jnp.float32)) ** 2)


if __name__ == "__main__":
    key = jax.random.PRNGKey(0)

    # Main case: small batch of sentence embeddings, lane-dense hidden size.
    B, D = 16, 128
    kq, kp, kn, kl = jax.random.split(key, 4)
    emb_query = jax.random.normal(kq, (B, D), dtype=jnp.float32)
    emb_pos = jax.random.normal(kp, (B, D), dtype=jnp.float32)
    emb_neg = jax.random.normal(kn, (B, D), dtype=jnp.float32)
    labels = jax.random.normal(kl, (B,), dtype=jnp.float32)  # teacher margins

    loss = jax.block_until_ready(
        margin_mse_loss(emb_query, emb_pos, emb_neg, labels, scale=1.0))
    ref = margin_mse_loss_ref(emb_query, emb_pos, emb_neg, labels, scale=1.0)
    assert jnp.allclose(loss, ref, rtol=1e-5, atol=1e-5), (loss, ref)

    # Uneven batch (non-multiple-of-8, single full-array block) + non-unit scale.
    loss2 = jax.block_until_ready(
        margin_mse_loss(emb_query[:12], emb_pos[:12], emb_neg[:12],
                        labels[:12], scale=2.0))
    ref2 = margin_mse_loss_ref(emb_query[:12], emb_pos[:12], emb_neg[:12],
                               labels[:12], scale=2.0)
    assert jnp.allclose(loss2, ref2, rtol=1e-5, atol=1e-5), (loss2, ref2)

    # Multi-block grid with a partial (in-kernel masked) tail block.
    B3 = 20
    q3 = jax.random.normal(kq, (B3, D), dtype=jnp.float32)
    p3 = jax.random.normal(kp, (B3, D), dtype=jnp.float32)
    n3 = jax.random.normal(kn, (B3, D), dtype=jnp.float32)
    l3 = jax.random.normal(kl, (B3,), dtype=jnp.float32)
    loss3 = jax.block_until_ready(
        margin_mse_loss(q3, p3, n3, l3, scale=1.0, max_block_rows=8))
    ref3 = margin_mse_loss_ref(q3, p3, n3, l3, scale=1.0)
    assert jnp.allclose(loss3, ref3, rtol=1e-5, atol=1e-5), (loss3, ref3)

    # bf16 embeddings in HBM (halved DMA bytes); kernel upcasts per-vreg to f32.
    qb = emb_query.astype(jnp.bfloat16)
    pb = emb_pos.astype(jnp.bfloat16)
    nb16 = emb_neg.astype(jnp.bfloat16)
    loss4 = jax.block_until_ready(margin_mse_loss(qb, pb, nb16, labels, scale=1.0))
    ref4 = margin_mse_loss_ref(qb, pb, nb16, labels, scale=1.0)
    assert jnp.allclose(loss4, ref4, rtol=1e-3, atol=1e-3), (loss4, ref4)

    print("KERNEL_OK")
</pallas_src>

<mosaic_0001>
module attributes {stable_mosaic.version = 11 : i64} {
  func.func @_margin_mse_kernel(%arg0: i32, %arg1: memref<16x128xf32, #tpu.memory_space<vmem>>, %arg2: memref<16x128xf32, #tpu.memory_space<vmem>>, %arg3: memref<16x128xf32, #tpu.memory_space<vmem>>, %arg4: memref<16x1xf32, #tpu.memory_space<vmem>>, %arg5: memref<1x128xf32, #tpu.memory_space<vmem>>) attributes {dimension_semantics = [#tpu.dimension_semantics<parallel>], iteration_bounds = array<i64: 1>, scalar_prefetch = 0 : i64, scratch_operands = 0 : i64, tpu.core_type = #tpu.core_type<tc>, window_params = [{transform_indices = @transform_0, window_bounds = array<i64: 16, 128>}, {transform_indices = @transform_1, window_bounds = array<i64: 16, 128>}, {transform_indices = @transform_2, window_bounds = array<i64: 16, 128>}, {transform_indices = @transform_3, window_bounds = array<i64: 16, 1>}, {transform_indices = @transform_4, window_bounds = array<i64: 1, 128>}]} {
    %c0 = arith.constant 0 : index
    %c0_0 = arith.constant 0 : index
    %0 = vector.load %arg1[%c0, %c0_0] : memref<16x128xf32, #tpu.memory_space<vmem>>, vector<16x128xf32>
    %c0_1 = arith.constant 0 : index
    %c0_2 = arith.constant 0 : index
    %1 = vector.load %arg2[%c0_1, %c0_2] : memref<16x128xf32, #tpu.memory_space<vmem>>, vector<16x128xf32>
    %c0_3 = arith.constant 0 : index
    %c0_4 = arith.constant 0 : index
    %2 = vector.load %arg3[%c0_3, %c0_4] : memref<16x128xf32, #tpu.memory_space<vmem>>, vector<16x128xf32>
    %3 = arith.subf %1, %2 : vector<16x128xf32>
    %4 = arith.mulf %0, %3 : vector<16x128xf32>
    %cst = arith.constant dense<0.000000e+00> : vector<16xf32>
    %5 = vector.multi_reduction <add>, %4, %cst [1] : vector<16x128xf32> to vector<16xf32>
    %6 = vector.shape_cast %5 : vector<16xf32> to vector<16x1xf32>
    %c0_5 = arith.constant 0 : index
    %c0_6 = arith.constant 0 : index
    %7 = vector.load %arg4[%c0_5, %c0_6] : memref<16x1xf32, #tpu.memory_space<vmem>>, vector<16x1xf32>
    %8 = arith.subf %6, %7 : vector<16x1xf32>
    %9 = arith.mulf %8, %8 : vector<16x1xf32>
    %cst_7 = arith.constant dense<0.000000e+00> : vector<1xf32>
    %10 = vector.multi_reduction <add>, %9, %cst_7 [0] : vector<16x1xf32> to vector<1xf32>
    %11 = vector.shape_cast %10 : vector<1xf32> to vector<1x1xf32>
    %12 = vector.shape_cast %11 : vector<1x1xf32> to vector<1x1xf32>
    %13 = vector.broadcast %12 : vector<1x1xf32> to vector<1x128xf32>
    %c0_8 = arith.constant 0 : index
    %c0_9 = arith.constant 0 : index
    %14 = vector.load %arg5[%c0_8, %c0_9] : memref<1x128xf32, #tpu.memory_space<vmem>>, vector<1x128xf32>
    tpu.vector_store %arg5[%c0_8, %c0_9], %13 {strides = array<i32>} : memref<1x128xf32, #tpu.memory_space<vmem>>, vector<1x128xf32>,
    return
  }
  func.func @transform_0(%arg0: i32) -> (i32, i32) {
    %c0_i32 = arith.constant 0 : i32
    %c0_i32_0 = arith.constant 0 : i32
    return %arg0, %c0_i32 : i32, i32
  }
  func.func @transform_1(%arg0: i32) -> (i32, i32) {
    %c0_i32 = arith.constant 0 : i32
    %c0_i32_0 = arith.constant 0 : i32
    return %arg0, %c0_i32 : i32, i32
  }
  func.func @transform_2(%arg0: i32) -> (i32, i32) {
    %c0_i32 = arith.constant 0 : i32
    %c0_i32_0 = arith.constant 0 : i32
    return %arg0, %c0_i32 : i32, i32
  }
  func.func @transform_3(%arg0: i32) -> (i32, i32) {
    %c0_i32 = arith.constant 0 : i32
    %c0_i32_0 = arith.constant 0 : i32
    return %arg0, %c0_i32 : i32, i32
  }
  func.func @transform_4(%arg0: i32) -> (i32, i32) {
    %c0_i32 = arith.constant 0 : i32
    %c0_i32_0 = arith.constant 0 : i32
    return %arg0, %c0_i32 : i32, i32
  }
}

</mosaic_0001>

<bundles_post_ra>
// kernel: tpu_custom_call.1
= control target key start
LH: loop header
LB: loop body
LE: loop exit
PB: predicated region body
PF: predicated region fallthrough
CT: control target
= control target key end

     0   :  { %9 = vsyncpa [#allocation3], 0  ;;  %s257_s0 = inlined_call_operand.vmem [shape: f32[16,128], index: 0, kind: input, shape index: {}]   ;;  %s258_s1 = inlined_call_operand.hbm [shape: f32[16,128], index: 1, kind: input, shape index: {}]   ;;  %s259_s2 = inlined_call_operand.hbm [shape: f32[16,128], index: 2, kind: input, shape index: {}]   ;;  %s260_s3 = inlined_call_operand.vmem [shape: f32[16,1], index: 3, kind: input, shape index: {}]   ;;  %s261_s4 = inlined_call_operand.hbm [shape: f32[1,128], index: 4, kind: output, shape index: {}]  }
   0x1   :  { %10 = vsyncpa [#allocation6], 0 }
   0x2   :  { %11 = vsyncpa [#allocation4], 0  ;;  %s178_s15 = smov [#allocation2]   ;;  %s106_s19 = scalar_lea.hbm %s258_s1, 256 }
   0x3   :  { %s19_s16 = sshll.u32 %s178_s15, 4  ;;  %p107_p0 = scmp.ne.s32.totalorder %s258_s1, %s106_s19  ;;  %s20_s16 = int_to_ptr.vmem [resolvable:$true] %s19_s16 }
   0x4   :  { %p110_p1 = scmp.lt.u32.totalorder %s106_s19, %s258_s1 }
   0x6   :  { %p112_p2 = pnand %p110_p1, %p107_p0 }
   0x8   :  { %115 = shalt.err (!%p112_p2)
}
   0x9   :  { %s116_s24 = scalar_lea.vmem %s20_s16, 256  ;;  %p121_p4 = scmp.lt.s32.totalorder %s20_s16, %s20_s16 }
   0xa   :  { %p117_p3 = scmp.ne.s32.totalorder %s20_s16, %s116_s24  ;;  %p122_p5 = scmp.lt.s32.totalorder %s116_s24, %s116_s24 }
   0xc   :  { %p123_p6 = por %p122_p5, %p121_p4 }
   0xe   :  { %p124_p7 = pnand %p123_p6, %p117_p3 }
  0x10   :  { %127 = shalt.err (!%p124_p7)
}
  0x11   :  { %s179_s25 = smov 128   ;;  %s180_s26 = smov 8  }
  0x12   :  { %25 = dma.hbm_to_vmem [thread:$0]  %s258_s1, 256, %s20_s16, [#allocation3], %s179_s25, %s179_s25, %s180_s26  }
  0x13   :  { %s181_s29 = smov [#allocation5]   ;;  %s128_s7 = scalar_lea.hbm %s259_s2, 256 }
  0x14   :  { %s31_s30 = sshll.u32 %s181_s29, 4  ;;  %p129_p8 = scmp.ne.s32.totalorder %s259_s2, %s128_s7  ;;  %s32_s30 = int_to_ptr.vmem [resolvable:$true] %s31_s30 }
  0x15   :  { %p132_p9 = scmp.lt.u32.totalorder %s128_s7, %s259_s2 }
  0x17   :  { %p134_p10 = pnand %p132_p9, %p129_p8 }
  0x19   :  { %137 = shalt.err (!%p134_p10)
}
  0x1a   :  { %s138_s12 = scalar_lea.vmem %s32_s30, 256  ;;  %p143_p12 = scmp.lt.s32.totalorder %s32_s30, %s32_s30 }
  0x1b   :  { %p139_p11 = scmp.ne.s32.totalorder %s32_s30, %s138_s12  ;;  %p144_p13 = scmp.lt.s32.totalorder %s138_s12, %s138_s12 }
  0x1d   :  { %p145_p0 = por %p144_p13, %p143_p12 }
  0x1f   :  { %p146_p1 = pnand %p145_p0, %p139_p11 }
  0x21   :  { %149 = shalt.err (!%p146_p1)
}
  0x22   :  { %37 = dma.hbm_to_vmem [thread:$0]  %s259_s2, 256, %s32_s30, [#allocation6], %s179_s25, %s179_s25, %s180_s26  }
  0x23   :  { %172 = dma.done.wait [#allocation3], 256  }
  0x24   :  { %173 = vsyncadd [#allocation3], 4294967040 }
  0x25   :  { %174 = dma.done.wait [#allocation6], 256  }
  0x26   :  { %175 = vsyncadd [#allocation6], 4294967040  ;;  %v46_v0 = vld [vmem:[%s257_s0] sm:$0xff]  ;;  %v50_v2 = vld [vmem:[#allocation5] sm:$0xff]  ;;  %v182_v10 = vmov 0   ;;  %vm66_vm0 = vcmask 7168  }
  0x27   :  { %v48_v1 = vld [vmem:[#allocation2] sm:$0xff]  ;;  %v49_v4 = vld [vmem:[#allocation2 + $0x8] sm:$0xff]  ;;  %v51_v5 = vld [vmem:[#allocation5 + $0x8] sm:$0xff]  ;;  %104 = vset.pattern.permute.xlu1 %v182_v10  ;;  %105 = vset.pattern.permute.xlu0 %v182_v10 }
  0x28   :  { %v52_v3 = vsub.f32 %v48_v1, %v50_v2  ;;  %v47_v6 = vld [vmem:[%s257_s0 + $0x8] sm:$0xff]  ;;  %v53_v7 = vsub.f32 %v49_v4, %v51_v5  ;;  %v60_v11 = vld [vmem:[%s260_s3] sm:$0xff]  ;;  %s183_s0 = smov [#allocation7]  }
  0x29   :  { %v61_v14 = vld [vmem:[%s260_s3 + $0x8] sm:$0xff]  ;;  %s88_s21 = sshll.u32 %s183_s0, 4  ;;  %s89_s21 = int_to_ptr.vmem [resolvable:$true] %s88_s21 }
  0x2a   :  { %v54_v8 = vmul.f32 %v52_v3, %v46_v0  ;;  %v55_v9 = vmul.f32 %v53_v7, %v47_v6  ;;  %s150_s3 = scalar_lea.vmem %s89_s21, 16  ;;  %s154_s22 = scalar_lea.vmem %s89_s21, 32 }
  0x2b   :  { %p151_p2 = scmp.ne.s32.totalorder %s89_s21, %s150_s3  ;;  %p155_p3 = scmp.lt.s32.totalorder %s89_s21, %s89_s21 }
  0x2c   :  { %56 = vadd.xlane.f32.xlu0 %v54_v8  ;;  %p156_p4 = scmp.lt.s32.totalorder %s154_s22, %s150_s3 }
  0x2e   :  { %p157_p5 = por %p156_p4, %p155_p3 }
  0x30   :  { %58 = vadd.xlane.f32.xlu0 %v55_v9  ;;  %p158_p6 = pnand %p157_p5, %p151_p2 }
  0xb9   :  { %v57_v12 = vpop.xlane.xlu0 %56 }
  0xba   :  { %v62_v13 = vsub.f32 %v57_v12, %v60_v11 }
  0xbc   :  { %v64_v16 = vmul.f32 %v62_v13, %v62_v13 }
  0xbd   :  { %v59_v15 = vpop.xlane.xlu0 %58 }
  0xbe   :  { %v63_v17 = vsub.f32 %v59_v15, %v61_v14  ;;  %v67_v19 = vsel %vm66_vm0, %v64_v16, 0.0 }
  0xc0   :  { %v65_v18 = vmul.f32 %v63_v17, %v63_v17 }
  0xc2   :  { %v68_v20 = vsel %vm66_vm0, %v65_v18, 0.0 }
  0xc3   :  { %v69_v21 = vadd.f32 %v68_v20, %v67_v19 }
  0xc5   :  { %v70_v22 = vrot.slane %v69_v21, 4 }
  0xc7   :  { %v71_v23 = vadd.f32 %v70_v22, %v69_v21 }
  0xc9   :  { %v72_v24 = vrot.slane %v71_v23, 2 }
  0xcb   :  { %v73_v25 = vadd.f32 %v72_v24, %v71_v23 }
  0xcd   :  { %v74_v26 = vrot.slane %v73_v25, 1 }
  0xcf   :  { %v75_v27 = vadd.f32 %v74_v26, %v73_v25 }
  0xd1   :  { %78 = vperm.xlu1 %104, %v75_v27  }
 0x150   :  { %v79_v28 = vpop.permute.xlu1 %78 }
 0x151   :  { %81 = vst [vmem:[#allocation7] sm:$0x1] %v79_v28 }
 0x152   :  { %161 = shalt.err (!%p158_p6)
}
 0x153   :  { %s162_s25 = scalar_lea.hbm %s261_s4, 16 }
 0x154   :  { %p163_p7 = scmp.ne.s32.totalorder %s261_s4, %s162_s25  ;;  %p166_p8 = scmp.lt.u32.totalorder %s162_s25, %s261_s4 }
 0x156   :  { %p168_p9 = pnand %p166_p8, %p163_p7 }
 0x158   :  { %171 = shalt.err (!%p168_p9)
}
 0x159   :  { %91 = dma.vmem_to_hbm [thread:$0]  %s89_s21, 16, %s261_s4, [#allocation4]  }
 0x15a   :  { %176 = dma.done.wait [#allocation4], 16  }
 0x15b   :  { %177 = vsyncadd [#allocation4], 4294967280 }
 0x15c   :  { %95 = vsyncpa [#allocation3], 1 }
 0x15d   :  { %96 = vsyncpa [#allocation6], 1 }
 0x15e   :  { %97 = vsyncpa [#allocation4], 1 }

</bundles_post_ra>
